<compile_context>
chip_gen: v7x
topology: tpu7x:2x2x1
jax: 0.10.0
libtpu: 0.0.40
codegen_flags: <defaults>
</compile_context>

<pallas_src>
import functools

import jax
import jax.numpy as jnp
from jax import lax
from jax.experimental import pallas as pl
from jax.experimental.pallas import tpu as pltpu


_MASK_VALUE = -1e30  # finite "-inf": keeps max()/exp() free of inf-inf NaNs


def _round_up(n, m):
    return ((n + m - 1) // m) * m


def _vmem_limit_bytes():
    """Generation-aware scoped-VMEM budget: <= ~3/4 of physical VMEM, capped at 96 MiB."""
    cap = None
    try:
        cap = getattr(pltpu.get_tpu_info(), "vmem_capacity_bytes", None)
    except Exception:
        cap = None
    if not cap:
        cap = 64 * 1024 * 1024          # conservative default (v7x physical VMEM)
    return int(min(96 * 1024 * 1024, (cap * 3) // 4))


def _pick_tile(n_pad):
    """Sequence tile: prefer 256 (v6e/v7x MXU width), else 128. n_pad is a 128-multiple."""
    for t in (256, 128):
        if n_pad % t == 0:
            return t
    return n_pad


def _qkv_proj_kernel(x_ref, wq_ref, wk_ref, wv_ref, q_ref, k_ref, v_ref):
    # x_ref: (TN, D); w*_ref: (D, inner); q/k/v_ref: (TN, inner)  [lane-dense stores].
    x = x_ref[...]                      # stays in input dtype (bf16-friendly MXU path)
    q_ref[...] = jnp.dot(x, wq_ref[...],
                         preferred_element_type=jnp.float32).astype(q_ref.dtype)
    k_ref[...] = jnp.dot(x, wk_ref[...],
                         preferred_element_type=jnp.float32).astype(k_ref.dtype)
    v_ref[...] = jnp.dot(x, wv_ref[...],
                         preferred_element_type=jnp.float32).astype(v_ref.dtype)


def _flash_attn_out_kernel(q_ref, k_ref, v_ref, wout_ref, g_ref, o_ref,
                           m_sc, l_sc, acc_sc, *,
                           heads, dim_head, n_valid, needs_mask, eps, exact_recip):
    # q_ref: (TQ, inner); k/v_ref: (TK, inner); wout_ref: (inner, D); g_ref: (1, D);
    # o_ref: (TQ, D); scratch: m/l (H, TQ, 1) f32, acc (H, TQ, dh) f32.
    ki = pl.program_id(2)
    tk = k_ref.shape[0]

    @pl.when(ki == 0)
    def _init():
        m_sc[...] = jnp.full(m_sc.shape, _MASK_VALUE, jnp.float32)
        l_sc[...] = jnp.zeros(l_sc.shape, jnp.float32)
        acc_sc[...] = jnp.zeros(acc_sc.shape, jnp.float32)

    if needs_mask:
        # Mask padded key columns (shared across heads); padded query rows are
        # sliced off in the wrapper.
        col = ki * tk + lax.broadcasted_iota(jnp.int32, (1, tk), 1)
        key_mask = col < n_valid                               # (1, TK)

    # Per-head online softmax: live score/probability tiles are (TQ, TK), not
    # (H, TQ, TK), which keeps vreg pressure / spills ~H-fold lower.
    for h in range(heads):
        hs = h * dim_head
        q_h = q_ref[:, hs:hs + dim_head]     # (TQ, dh), already scaled (folded into Wq)
        k_h = k_ref[:, hs:hs + dim_head]     # (TK, dh)
        v_h = v_ref[:, hs:hs + dim_head]     # (TK, dh)

        # q_h @ k_h^T with f32 accumulation, no explicit transpose.
        s = lax.dot_general(q_h, k_h, (((1,), (1,)), ((), ())),
                            preferred_element_type=jnp.float32)   # (TQ, TK)
        if needs_mask:
            s = jnp.where(key_mask, s, _MASK_VALUE)

        m_prev = m_sc[h]                                          # (TQ, 1)
        m_new = jnp.maximum(m_prev, jnp.max(s, axis=-1, keepdims=True))
        alpha = jnp.exp(m_prev - m_new)
        p = jnp.exp(s - m_new)                                    # unnormalized probs

        l_sc[h] = alpha * l_sc[h] + jnp.sum(p, axis=-1, keepdims=True)
        acc_sc[h] = alpha * acc_sc[h] + jnp.dot(
            p.astype(v_h.dtype), v_h, preferred_element_type=jnp.float32)
        m_sc[h] = m_new

    @pl.when(ki == pl.num_programs(2) - 1)
    def _finalize():
        # Deferred softmax normalization (single per-row rescale).
        inv_l = pl.reciprocal(l_sc[...], approx=not exact_recip)  # (H, TQ, 1)
        out = (acc_sc[...] * inv_l).astype(wout_ref.dtype)        # (H, TQ, dh)
        # Lane-concat heads once, then ONE full-depth (TQ, inner) @ (inner, D) matmul.
        out_flat = jnp.concatenate([out[h] for h in range(heads)], axis=-1)
        proj = jnp.dot(out_flat, wout_ref[...], preferred_element_type=jnp.float32)
        # LayerNorm (no bias, biased variance) with gain g, in f32.
        mean = jnp.mean(proj, axis=-1, keepdims=True)
        cen = proj - mean
        var = jnp.mean(cen * cen, axis=-1, keepdims=True)
        y = cen * lax.rsqrt(var + eps) * g_ref[...].astype(jnp.float32)
        o_ref[...] = y.astype(o_ref.dtype)                        # lane-dense (TQ, D) store


def attention_forward(x, wqkv, wout, g, *, heads, dim_head):
    """x: (B, N, D); wqkv: (3*inner, D); wout: (D, inner); g: (D,)  (PyTorch layouts)."""
    B, N, D = x.shape
    inner = heads * dim_head
    assert wqkv.shape == (3 * inner, D) and wout.shape == (D, inner) and g.shape == (D,)
    scale = dim_head ** (-0.5)
    eps = 1e-5 if x.dtype == jnp.float32 else 1e-3

    # ---- one-time weight transforms (constant preprocessing, outside kernels) ----
    wq, wk, wv = jnp.split(wqkv, 3, axis=0)                      # each (inner, D)
    wq = wq * jnp.asarray(scale, wq.dtype)                       # fold q scale into weights
    wq_t, wk_t, wv_t = wq.T, wk.T, wv.T                          # (D, inner)
    wout_t = wout.T                                              # (inner, D)
    g2 = g.reshape(1, D)

    # ---- pad sequence to a multiple of 128 (masked in the attention kernel) ----
    n_pad = max(_round_up(N, 128), 128)
    x_p = jnp.pad(x, ((0, 0), (0, n_pad - N), (0, 0))) if n_pad != N else x

    tn = _pick_tile(n_pad)     # QKV projection sequence tile
    tq = _pick_tile(n_pad)     # query tile
    tk = _pick_tile(n_pad)     # key/value tile
    vmem_limit = _vmem_limit_bytes()

    # ---- kernel 1: fused QKV projection, lane-dense (B, N, inner) outputs ----
    w_spec = pl.BlockSpec((D, inner), lambda b, n: (0, 0))
    qkv_out_spec = pl.BlockSpec((pl.Squeezed(), tn, inner), lambda b, n: (b, n, 0))
    q_l, k_l, v_l = pl.pallas_call(
        _qkv_proj_kernel,
        out_shape=[jax.ShapeDtypeStruct((B, n_pad, inner), x.dtype)] * 3,
        grid_spec=pltpu.PrefetchScalarGridSpec(
            num_scalar_prefetch=0,
            grid=(B, n_pad // tn),
            in_specs=[
                pl.BlockSpec((pl.Squeezed(), tn, D), lambda b, n: (b, n, 0)),
                w_spec, w_spec, w_spec,
            ],
            out_specs=[qkv_out_spec, qkv_out_spec, qkv_out_spec],
        ),
        compiler_params=pltpu.CompilerParams(
            dimension_semantics=("parallel", "parallel"),
            vmem_limit_bytes=vmem_limit),
    )(x_p, wq_t, wk_t, wv_t)

    # ---- kernel 2: flash attention + fused output projection + LayerNorm ----
    kv_spec = pl.BlockSpec((pl.Squeezed(), tk, inner), lambda b, qi, ki: (b, ki, 0))
    y = pl.pallas_call(
        functools.partial(
            _flash_attn_out_kernel,
            heads=heads, dim_head=dim_head, n_valid=N,
            needs_mask=(n_pad != N), eps=eps,
            exact_recip=(x.dtype == jnp.float32)),
        out_shape=jax.ShapeDtypeStruct((B, n_pad, D), x.dtype),
        grid_spec=pltpu.PrefetchScalarGridSpec(
            num_scalar_prefetch=0,
            grid=(B, n_pad // tq, n_pad // tk),
            in_specs=[
                pl.BlockSpec((pl.Squeezed(), tq, inner), lambda b, qi, ki: (b, qi, 0)),
                kv_spec,
                kv_spec,
                pl.BlockSpec((inner, D), lambda b, qi, ki: (0, 0)),
                pl.BlockSpec((1, D), lambda b, qi, ki: (0, 0)),
            ],
            out_specs=pl.BlockSpec((pl.Squeezed(), tq, D), lambda b, qi, ki: (b, qi, 0)),
            scratch_shapes=[
                pltpu.VMEM((heads, tq, 1), jnp.float32),          # running max
                pltpu.VMEM((heads, tq, 1), jnp.float32),          # running sum
                pltpu.VMEM((heads, tq, dim_head), jnp.float32),   # f32 accumulator
            ],
        ),
        compiler_params=pltpu.CompilerParams(
            dimension_semantics=("parallel", "parallel", "arbitrary"),
            vmem_limit_bytes=vmem_limit),
    )(q_l, k_l, v_l, wout_t, g2)

    return y[:, :N, :] if n_pad != N else y


def attention_reference(x, wqkv, wout, g, *, heads, dim_head):
    """Pure-JAX reference mirroring the PyTorch module."""
    B, N, D = x.shape
    inner = heads * dim_head
    scale = dim_head ** (-0.5)
    eps = 1e-5 if x.dtype == jnp.float32 else 1e-3

    qkv = jnp.einsum('bnd,ed->bne', x, wqkv)                     # (B, N, 3*inner)
    q, k, v = jnp.split(qkv, 3, axis=-1)

    def to_heads(t):
        return t.reshape(B, N, heads, dim_head).transpose(0, 2, 1, 3)

    q, k, v = map(to_heads, (q, k, v))
    q = q * scale
    sim = jnp.einsum('bhid,bhjd->bhij', q, k)
    attn = jax.nn.softmax(sim.astype(jnp.float32), axis=-1).astype(sim.dtype)
    out = jnp.einsum('bhij,bhjd->bhid', attn, v)
    out = out.transpose(0, 2, 1, 3).reshape(B, N, inner)
    proj = jnp.einsum('bni,di->bnd', out, wout)
    mean = jnp.mean(proj, axis=-1, keepdims=True)
    var = jnp.mean((proj - mean) ** 2, axis=-1, keepdims=True)
    return (proj - mean) * lax.rsqrt(var + eps) * g


if __name__ == "__main__":
    # Small shapes consistent with the module (also exercises ragged-N padding/masking).
    B, N, D = 2, 8, 32
    heads, dim_head = 4, 16
    inner = heads * dim_head

    key = jax.random.PRNGKey(0)
    kx, kq, ko = jax.random.split(key, 3)

    x = jax.random.normal(kx, (B, N, D), dtype=jnp.float32)
    # PyTorch Linear weight shapes: (out_features, in_features).
    wqkv = jax.random.normal(kq, (3 * inner, D), dtype=jnp.float32) * (D ** -0.5)
    wout = jax.random.normal(ko, (D, inner), dtype=jnp.float32) * (inner ** -0.5)
    g = jnp.ones((D,), dtype=jnp.float32)   # LayerNorm gain init = ones

    y = attention_forward(x, wqkv, wout, g, heads=heads, dim_head=dim_head)
    y = jax.block_until_ready(y)

    y_ref = attention_reference(x, wqkv, wout, g, heads=heads, dim_head=dim_head)
    assert y.shape == (B, N, D)
    max_err = float(jnp.max(jnp.abs(y - y_ref)))
    assert jnp.allclose(y, y_ref, atol=5e-3, rtol=5e-3), (
        f"mismatch vs reference (max abs err = {max_err})")

    print("KERNEL_OK")
</pallas_src>

<mosaic_0001>
module attributes {stable_mosaic.version = 11 : i64} {
  func.func @_qkv_proj_kernel(%arg0: i32, %arg1: i32, %arg2: memref<1x128x32xf32, #tpu.memory_space<vmem>>, %arg3: memref<32x64xf32, #tpu.memory_space<vmem>>, %arg4: memref<32x64xf32, #tpu.memory_space<vmem>>, %arg5: memref<32x64xf32, #tpu.memory_space<vmem>>, %arg6: memref<1x128x64xf32, #tpu.memory_space<vmem>>, %arg7: memref<1x128x64xf32, #tpu.memory_space<vmem>>, %arg8: memref<1x128x64xf32, #tpu.memory_space<vmem>>) attributes {dimension_semantics = [#tpu.dimension_semantics<parallel>, #tpu.dimension_semantics<parallel>], iteration_bounds = array<i64: 2, 1>, scalar_prefetch = 0 : i64, scratch_operands = 0 : i64, tpu.core_type = #tpu.core_type<tc>, window_params = [{transform_indices = @transform_0, window_bounds = array<i64: 1, 128, 32>}, {pipeline_mode = #tpu.pipeline_mode<synchronous>, transform_indices = @transform_1, window_bounds = array<i64: 32, 64>}, {pipeline_mode = #tpu.pipeline_mode<synchronous>, transform_indices = @transform_2, window_bounds = array<i64: 32, 64>}, {pipeline_mode = #tpu.pipeline_mode<synchronous>, transform_indices = @transform_3, window_bounds = array<i64: 32, 64>}, {transform_indices = @transform_4, window_bounds = array<i64: 1, 128, 64>}, {transform_indices = @transform_5, window_bounds = array<i64: 1, 128, 64>}, {transform_indices = @transform_6, window_bounds = array<i64: 1, 128, 64>}]} {
    %c0 = arith.constant 0 : index
    %c0_0 = arith.constant 0 : index
    %c0_1 = arith.constant 0 : index
    %0 = vector.load %arg2[%c0, %c0_0, %c0_1] : memref<1x128x32xf32, #tpu.memory_space<vmem>>, vector<1x128x32xf32>
    %1 = vector.shape_cast %0 : vector<1x128x32xf32> to vector<128x32xf32>
    %c0_2 = arith.constant 0 : index
    %c0_3 = arith.constant 0 : index
    %2 = vector.load %arg3[%c0_2, %c0_3] : memref<32x64xf32, #tpu.memory_space<vmem>>, vector<32x64xf32>
    %cst = arith.constant dense<0.000000e+00> : vector<128x64xf32>
    %3 = tpu.matmul %1, %2, %cst {dimension_numbers = #tpu.dot_dimension_numbers<[1], [0], [0], [1], [0, 0, 1, 1], [], []>} : vector<128x32xf32>, vector<32x64xf32>, vector<128x64xf32> -> vector<128x64xf32>
    %c0_4 = arith.constant 0 : index
    %c0_5 = arith.constant 0 : index
    %c0_6 = arith.constant 0 : index
    %4 = vector.load %arg6[%c0_4, %c0_5, %c0_6] : memref<1x128x64xf32, #tpu.memory_space<vmem>>, vector<1x128x64xf32>
    %5 = vector.shape_cast %4 : vector<1x128x64xf32> to vector<128x64xf32>
    %6 = vector.shape_cast %3 : vector<128x64xf32> to vector<1x128x64xf32>
    tpu.vector_store %arg6[%c0_4, %c0_5, %c0_6], %6 {strides = array<i32>} : memref<1x128x64xf32, #tpu.memory_space<vmem>>, vector<1x128x64xf32>,
    %c0_7 = arith.constant 0 : index
    %c0_8 = arith.constant 0 : index
    %7 = vector.load %arg4[%c0_7, %c0_8] : memref<32x64xf32, #tpu.memory_space<vmem>>, vector<32x64xf32>
    %cst_9 = arith.constant dense<0.000000e+00> : vector<128x64xf32>
    %8 = tpu.matmul %1, %7, %cst_9 {dimension_numbers = #tpu.dot_dimension_numbers<[1], [0], [0], [1], [0, 0, 1, 1], [], []>} : vector<128x32xf32>, vector<32x64xf32>, vector<128x64xf32> -> vector<128x64xf32>
    %c0_10 = arith.constant 0 : index
    %c0_11 = arith.constant 0 : index
    %c0_12 = arith.constant 0 : index
    %9 = vector.load %arg7[%c0_10, %c0_11, %c0_12] : memref<1x128x64xf32, #tpu.memory_space<vmem>>, vector<1x128x64xf32>
    %10 = vector.shape_cast %9 : vector<1x128x64xf32> to vector<128x64xf32>
    %11 = vector.shape_cast %8 : vector<128x64xf32> to vector<1x128x64xf32>
    tpu.vector_store %arg7[%c0_10, %c0_11, %c0_12], %11 {strides = array<i32>} : memref<1x128x64xf32, #tpu.memory_space<vmem>>, vector<1x128x64xf32>,
    %c0_13 = arith.constant 0 : index
    %c0_14 = arith.constant 0 : index
    %12 = vector.load %arg5[%c0_13, %c0_14] : memref<32x64xf32, #tpu.memory_space<vmem>>, vector<32x64xf32>
    %cst_15 = arith.constant dense<0.000000e+00> : vector<128x64xf32>
    %13 = tpu.matmul %1, %12, %cst_15 {dimension_numbers = #tpu.dot_dimension_numbers<[1], [0], [0], [1], [0, 0, 1, 1], [], []>} : vector<128x32xf32>, vector<32x64xf32>, vector<128x64xf32> -> vector<128x64xf32>
    %c0_16 = arith.constant 0 : index
    %c0_17 = arith.constant 0 : index
    %c0_18 = arith.constant 0 : index
    %14 = vector.load %arg8[%c0_16, %c0_17, %c0_18] : memref<1x128x64xf32, #tpu.memory_space<vmem>>, vector<1x128x64xf32>
    %15 = vector.shape_cast %14 : vector<1x128x64xf32> to vector<128x64xf32>
    %16 = vector.shape_cast %13 : vector<128x64xf32> to vector<1x128x64xf32>
    tpu.vector_store %arg8[%c0_16, %c0_17, %c0_18], %16 {strides = array<i32>} : memref<1x128x64xf32, #tpu.memory_space<vmem>>, vector<1x128x64xf32>,
    return
  }
  func.func @transform_0(%arg0: i32, %arg1: i32) -> (i32, i32, i32) {
    %c0_i32 = arith.constant 0 : i32
    %c0_i32_0 = arith.constant 0 : i32
    return %arg0, %arg1, %c0_i32 : i32, i32, i32
  }
  func.func @transform_1(%arg0: i32, %arg1: i32) -> (i32, i32) {
    %c0_i32 = arith.constant 0 : i32
    %c0_i32_0 = arith.constant 0 : i32
    %c0_i32_1 = arith.constant 0 : i32
    return %c0_i32, %c0_i32_0 : i32, i32
  }
  func.func @transform_2(%arg0: i32, %arg1: i32) -> (i32, i32) {
    %c0_i32 = arith.constant 0 : i32
    %c0_i32_0 = arith.constant 0 : i32
    %c0_i32_1 = arith.constant 0 : i32
    return %c0_i32, %c0_i32_0 : i32, i32
  }
  func.func @transform_3(%arg0: i32, %arg1: i32) -> (i32, i32) {
    %c0_i32 = arith.constant 0 : i32
    %c0_i32_0 = arith.constant 0 : i32
    %c0_i32_1 = arith.constant 0 : i32
    return %c0_i32, %c0_i32_0 : i32, i32
  }
  func.func @transform_4(%arg0: i32, %arg1: i32) -> (i32, i32, i32) {
    %c0_i32 = arith.constant 0 : i32
    %c0_i32_0 = arith.constant 0 : i32
    return %arg0, %arg1, %c0_i32 : i32, i32, i32
  }
  func.func @transform_5(%arg0: i32, %arg1: i32) -> (i32, i32, i32) {
    %c0_i32 = arith.constant 0 : i32
    %c0_i32_0 = arith.constant 0 : i32
    return %arg0, %arg1, %c0_i32 : i32, i32, i32
  }
  func.func @transform_6(%arg0: i32, %arg1: i32) -> (i32, i32, i32) {
    %c0_i32 = arith.constant 0 : i32
    %c0_i32_0 = arith.constant 0 : i32
    return %arg0, %arg1, %c0_i32 : i32, i32, i32
  }
}

</mosaic_0001>

<bundles_post_ra>
// kernel: tpu_custom_call.1
= control target key start
LH: loop header
LB: loop body
LE: loop exit
PB: predicated region body
PF: predicated region fallthrough
CT: control target
= control target key end

     0   :  { %s1420_s21 = smov 0   ;;  %s1422_s22 = smov 0   ;;  %s1674_s0 = inlined_call_operand.vmem [shape: f32[2,128,32], index: 0, kind: input, shape index: {}]   ;;  %s1675_s1 = inlined_call_operand.vmem [shape: f32[32,64], index: 1, kind: input, shape index: {}]   ;;  %s1676_s2 = inlined_call_operand.vmem [shape: f32[32,64], index: 2, kind: input, shape index: {}]   ;;  %s1677_s3 = inlined_call_operand.vmem [shape: f32[32,64], index: 3, kind: input, shape index: {}]   ;;  %s1678_s4 = inlined_call_operand.vmem [shape: f32[2,128,64], index: 4, kind: output, shape index: {0}]   ;;  %s1679_s5 = inlined_call_operand.vmem [shape: f32[2,128,64], index: 5, kind: output, shape index: {1}]   ;;  %s1680_s6 = inlined_call_operand.vmem [shape: f32[2,128,64], index: 6, kind: output, shape index: {2}]  }
   0x1   :  { %s1424_s23 = smov 0  }
   0x2 LB: > { %s29_s24 = sadd.s32 1, %s1379_s22  ;;  %p1090_p0 = scmp.ge.s32.totalorder %s1383_s23, 1  ;;  %s1383_s23 = sphi %s1424_s23, %s17_s23   ;;  %s1379_s22 = sphi %s1422_s22, %s1682_s22   ;;  %s1375_s21 = sphi %s1420_s21, %s1681_s21  }
   0x3   : > { %p31_p1 = scmp.ge.s32.totalorder %s29_s24, 2  ;;  %p242_p2 = scmp.lt.s32.totalorder %s1383_s23, 3 }
   0x5   : > { %s1684_s24 = smov (%p31_p1, %s29_s24), 0  ;;  %p243_p3 = pnand %p1090_p0, %p242_p2 }
   0x6   : > { %v354_v0 = vld [vmem:[%s1675_s1] sm:$0xff] (!%p243_p3)  ;;  %v355_v1 = vld [vmem:[%s1675_s1 + $0x8] sm:$0xff] (!%p243_p3)  ;;  %v356_v2 = vld [vmem:[%s1675_s1 + $0x10] sm:$0xff] (!%p243_p3)  ;;  %p299_p4 = scmp.lt.s32.totalorder (!%p243_p3), %s1375_s21, 1  ;;  %vm358_vm0 = vcmask (!%p243_p3), 261120   ;;  %vm552_vm1 = vcmask (!%p243_p3), 523264  }
   0x7   : > { %246 = sbr.rel (%p243_p3) target bundleno = 278 (0x116), region = 36  ;;  %v1309_v3 = vpack.c.bf16 (!%p243_p3), %v355_v1, %v354_v0  ;;  %v357_v4 = vld [vmem:[%s1675_s1 + $0x18] sm:$0xff] (!%p243_p3)  ;;  %v569_v5 = vld [vmem:[%s1676_s2] sm:$0xff] (!%p243_p3)  ;;  %v570_v7 = vld [vmem:[%s1676_s2 + $0x8] sm:$0xff] (!%p243_p3) }
   0x8   : > { %v1313_v6 = vpack.c.bf16 (!%p243_p3), %v357_v4, %v356_v2  ;;  %v734_v8 = vld [vmem:[%s1677_s3] sm:$0xff] (!%p243_p3)  ;;  %v735_v9 = vld [vmem:[%s1677_s3 + $0x8] sm:$0xff] (!%p243_p3)  ;;  %v1317_v10 = vpack.c.bf16 (!%p243_p3), %v570_v7, %v569_v5  ;;  %v571_v14 = vld [vmem:[%s1676_s2 + $0x10] sm:$0xff] (!%p243_p3) }
   0x9   : > { %1310 = vmatprep.subr.bf16.mxu0 (!%p243_p3), %v1309_v3  ;;  %1333 = vmatprep.subr.bf16.mxu1 (!%p243_p3), %v1309_v3  ;;  %v1325_v11 = vpack.c.bf16 (!%p243_p3), %v735_v9, %v734_v8  ;;  %v572_v15 = vld [vmem:[%s1676_s2 + $0x18] sm:$0xff] (!%p243_p3)  ;;  %v736_v16 = vld [vmem:[%s1677_s3 + $0x10] sm:$0xff] (!%p243_p3) }
   0xa   : > { %1312 = vmatpush3.bf16.msra.mxu0 (!%p243_p3), %v1309_v3  ;;  %1335 = vmatpush3.bf16.msra.mxu1 (!%p243_p3), %v1309_v3  ;;  %v737_v17 = vld [vmem:[%s1677_s3 + $0x18] sm:$0xff] (!%p243_p3)  ;;  %v1321_v22 = vpack.c.bf16 (!%p243_p3), %v572_v15, %v571_v14 }
   0xb   : > { %1314 = vmatprep.subr.bf16.mxu0 (!%p243_p3), %v1313_v6  ;;  %1334 = vmatprep.subr.bf16.mxu1 (!%p243_p3), %v1313_v6  ;;  %v1329_v23 = vpack.c.bf16 (!%p243_p3), %v737_v17, %v736_v16 }
   0xe   : > { %s1686_s21 = smov (!%p299_p4, %s1375_s21), 1  ;;  %1316 = vmatpush3.bf16.msra.mxu0 %v1313_v6  ;;  %1336 = vmatpush3.bf16.msra.mxu1 %v1313_v6 }
   0xf   : > { %s1462_s17 = sshll.u32 %s1686_s21, 7  ;;  %1318 = vmatprep.subr.bf16.mxu1 %v1317_v10  ;;  %1326 = vmatprep.subr.bf16.mxu0 %v1325_v11 }
  0x10   : > { %s1468_s20 = scalar_lea.vmem %s1674_s0, %s1462_s17  ;;  %s1555_s10 = scalar_lea.vmem %s1678_s4, %s1462_s17 }
  0x11   : > { %v338_v12 = vld [vmem:[%s1468_s20] sm:$0xff]  ;;  %v339_v18 = vld [vmem:[%s1468_s20 + $0x8] sm:$0xff]  ;;  %v340_v20 = vld [vmem:[%s1468_s20 + $0x10] sm:$0xff]  ;;  %s1593_s13 = scalar_lea.vmem %s1679_s5, %s1462_s17  ;;  %s1599_s16 = scalar_lea.vmem %s1680_s6, %s1462_s17 }
  0x12   : > { %v1472_v13 = vld [vmem:[%s1468_s20 + $0x40] sm:$0xff]  ;;  %1221 = vmatprep.mubr.msk.f32.mxu0 %vm358_vm0, %v338_v12  ;;  %v347_v19 = vld [vmem:[%s1468_s20 + $0x48] sm:$0xff]  ;;  %v348_v21 = vld [vmem:[%s1468_s20 + $0x50] sm:$0xff] }
  0x13   : > { %1233 = vmatprep.mubr.msk.f32.mxu1 %vm358_vm0, %v1472_v13  ;;  %1222 = vmatmul.mubr.msk.f32.vlgmr.msra.gmra.mrb[0].mxu0 %vm358_vm0, %v339_v18  ;;  %v341_v24 = vld [vmem:[%s1468_s20 + $0x18] sm:$0xff]  ;;  %v342_v26 = vld [vmem:[%s1468_s20 + $0x20] sm:$0xff]  ;;  %v343_v28 = vld [vmem:[%s1468_s20 + $0x28] sm:$0xff] }
  0x14   : > { %1234 = vmatmul.mubr.msk.f32.vlgmr.msra.gmra.mrb[0].mxu1 %vm358_vm0, %v347_v19  ;;  %1328 = vmatpush3.bf16.msra.mxu0 %v1325_v11  ;;  %v349_v25 = vld [vmem:[%s1468_s20 + $0x58] sm:$0xff]  ;;  %v350_v27 = vld [vmem:[%s1468_s20 + $0x60] sm:$0xff]  ;;  %v351_v29 = vld [vmem:[%s1468_s20 + $0x68] sm:$0xff] }
  0x15   : > { %1320 = vmatpush3.bf16.msra.mxu1 %v1317_v10  ;;  %1224 = vmatprep.mubr.msk.f32.mxu0 %vm358_vm0, %v340_v20  ;;  %v344_v30 = vld [vmem:[%s1468_s20 + $0x30] sm:$0xff]  ;;  %v345_v32 = vld [vmem:[%s1468_s20 + $0x38] sm:$0xff] }
  0x16   : > { %1236 = vmatprep.mubr.msk.f32.mxu1 %vm358_vm0, %v348_v21  ;;  %1322 = vmatprep.subr.bf16.mxu1 %v1321_v22  ;;  %v352_v31 = vld [vmem:[%s1468_s20 + $0x70] sm:$0xff]  ;;  %v353_v33 = vld [vmem:[%s1468_s20 + $0x78] sm:$0xff] }
  0x17   : > { %1330 = vmatprep.subr.bf16.mxu0 %v1329_v23  ;;  %1225 = vmatmul.mubr.msk.f32.gmra.mrb[2].mxu0 %vm358_vm0, %v341_v24 }
  0x18   : > { %1237 = vmatmul.mubr.msk.f32.gmra.mrb[2].mxu1 %vm358_vm0, %v349_v25  ;;  %1227 = vmatprep.mubr.msk.f32.mxu0 %vm358_vm0, %v342_v26 }
  0x19   : > { %1239 = vmatprep.mubr.msk.f32.mxu1 %vm358_vm0, %v350_v27  ;;  %1324 = vmatpush3.bf16.msra.mxu1 %v1321_v22 }
  0x1a   : > { %1332 = vmatpush3.bf16.msra.mxu0 %v1329_v23 }
  0x1b   : > { %1228 = vmatmul.mubr.msk.f32.gmra.mrb[4].mxu0 %vm358_vm0, %v343_v28 }
  0x1c   : > { %1240 = vmatmul.mubr.msk.f32.gmra.mrb[4].mxu1 %vm358_vm0, %v351_v29  ;;  %1230 = vmatprep.mubr.msk.f32.mxu0 %vm358_vm0, %v344_v30 }
  0x1d   : > { %1242 = vmatprep.mubr.msk.f32.mxu1 %vm358_vm0, %v352_v31 }
  0x1f   : > { %1231 = vmatmul.mubr.msk.f32.gmra.mrb[6].mxu0 %vm358_vm0, %v345_v32 }
  0x20   : > { %1243 = vmatmul.mubr.msk.f32.gmra.mrb[6].mxu1 %vm358_vm0, %v353_v33  ;;  %1285 = vmatprep.mubr.msk.f32.mxu0 %vm358_vm0, %v338_v12 }
  0x21   : > { %1253 = vmatprep.mubr.msk.f32.mxu1 %vm358_vm0, %v338_v12 }
  0x23   : > { %1286 = vmatmul.mubr.msk.f32.vlgmr.msra.gmra.mrb[8].mxu0 %vm358_vm0, %v339_v18 }
  0x24   : > { %1254 = vmatmul.mubr.msk.f32.vlgmr.msra.gmra.mrb[8].mxu1 %vm358_vm0, %v339_v18  ;;  %1288 = vmatprep.mubr.msk.f32.mxu0 %vm358_vm0, %v340_v20 }
  0x25   : > { %1256 = vmatprep.mubr.msk.f32.mxu1 %vm358_vm0, %v340_v20 }
  0x27   : > { %1289 = vmatmul.mubr.msk.f32.gmra.mrb[10].mxu0 %vm358_vm0, %v341_v24 }
  0x28   : > { %1257 = vmatmul.mubr.msk.f32.gmra.mrb[10].mxu1 %vm358_vm0, %v341_v24  ;;  %1291 = vmatprep.mubr.msk.f32.mxu0 %vm358_vm0, %v342_v26 }
  0x29   : > { %1259 = vmatprep.mubr.msk.f32.mxu1 %vm358_vm0, %v342_v26 }
  0x2b   : > { %1292 = vmatmul.mubr.msk.f32.gmra.mrb[12].mxu0 %vm358_vm0, %v343_v28 }
  0x2c   : > { %1260 = vmatmul.mubr.msk.f32.gmra.mrb[12].mxu1 %vm358_vm0, %v343_v28  ;;  %1294 = vmatprep.mubr.msk.f32.mxu0 %vm358_vm0, %v344_v30 }
  0x2d   : > { %1262 = vmatprep.mubr.msk.f32.mxu1 %vm358_vm0, %v344_v30 }
  0x2f   : > { %1295 = vmatmul.mubr.msk.f32.gmra.mrb[14].mxu0 %vm358_vm0, %v345_v32 }
  0x30   : > { %1263 = vmatmul.mubr.msk.f32.gmra.mrb[14].mxu1 %vm358_vm0, %v345_v32  ;;  %1297 = vmatprep.mubr.msk.f32.mxu0 %vm358_vm0, %v1472_v13 }
  0x31   : > { %1265 = vmatprep.mubr.msk.f32.mxu1 %vm358_vm0, %v1472_v13 }
  0x33   : > { %1298 = vmatmul.mubr.msk.f32.gmra.mrb[16].mxu0 %vm358_vm0, %v347_v19 }
  0x34   : > { %1266 = vmatmul.mubr.msk.f32.gmra.mrb[16].mxu1 %vm358_vm0, %v347_v19  ;;  %1300 = vmatprep.mubr.msk.f32.mxu0 %vm358_vm0, %v348_v21 }
  0x35   : > { %1268 = vmatprep.mubr.msk.f32.mxu1 %vm358_vm0, %v348_v21 }
  0x37   : > { %1301 = vmatmul.mubr.msk.f32.gmra.mrb[18].mxu0 %vm358_vm0, %v349_v25 }
  0x38   : > { %1269 = vmatmul.mubr.msk.f32.gmra.mrb[18].mxu1 %vm358_vm0, %v349_v25  ;;  %1303 = vmatprep.mubr.msk.f32.mxu0 %vm358_vm0, %v350_v27 }
  0x39   : > { %1271 = vmatprep.mubr.msk.f32.mxu1 %vm358_vm0, %v350_v27 }
  0x3b   : > { %1304 = vmatmul.mubr.msk.f32.gmra.mrb[20].mxu0 %vm358_vm0, %v351_v29 }
  0x3c   : > { %1272 = vmatmul.mubr.msk.f32.gmra.mrb[20].mxu1 %vm358_vm0, %v351_v29  ;;  %1306 = vmatprep.mubr.msk.f32.mxu0 %vm358_vm0, %v352_v31 }
  0x3d   : > { %1274 = vmatprep.mubr.msk.f32.mxu1 %vm358_vm0, %v352_v31 }
  0x3f   : > { %1307 = vmatmul.mubr.msk.f32.gmra.mrb[22].mxu0 %vm358_vm0, %v353_v33 }
  0x40   : > { %1275 = vmatmul.mubr.msk.f32.gmra.mrb[22].mxu1 %vm358_vm0, %v353_v33 }
  0xe6   : > { %v1223_v34 = vpop.f32.mrb[0].mxu0 }
  0xe7   : > { %v1235_v35 = vpop.f32.mrb[0].mxu1  ;;  %554 = vst.msk [vmem:[%s1555_s10 + $0x8] sm:$0xff] %vm552_vm1, %v1223_v34  ;;  %v473_v36 = vpop.f32.mrb[1].mxu0 }
  0xe8   : > { %562 = vst.msk [vmem:[%s1555_s10 + $0x48] sm:$0xff] %vm552_vm1, %v1235_v35  ;;  %v513_v37 = vpop.f32.mrb[1].mxu1  ;;  %553 = vst.msk [vmem:[%s1555_s10] sm:$0xff] %vm552_vm1, %v473_v36 }
  0xe9   : > { %561 = vst.msk [vmem:[%s1555_s10 + $0x40] sm:$0xff] %vm552_vm1, %v513_v37 }
  0xea   : > { %v1226_v38 = vpop.f32.mrb[2].mxu0 }
  0xeb   : > { %v1238_v39 = vpop.f32.mrb[2].mxu1  ;;  %556 = vst.msk [vmem:[%s1555_s10 + $0x18] sm:$0xff] %vm552_vm1, %v1226_v38  ;;  %v483_v40 = vpop.f32.mrb[3].mxu0 }
  0xec   : > { %564 = vst.msk [vmem:[%s1555_s10 + $0x58] sm:$0xff] %vm552_vm1, %v1238_v39  ;;  %v523_v41 = vpop.f32.mrb[3].mxu1  ;;  %555 = vst.msk [vmem:[%s1555_s10 + $0x10] sm:$0xff] %vm552_vm1, %v483_v40 }
  0xed   : > { %563 = vst.msk [vmem:[%s1555_s10 + $0x50] sm:$0xff] %vm552_vm1, %v523_v41 }
  0xee   : > { %v1229_v42 = vpop.f32.mrb[4].mxu0 }
  0xef   : > { %v1241_v43 = vpop.f32.mrb[4].mxu1  ;;  %558 = vst.msk [vmem:[%s1555_s10 + $0x28] sm:$0xff] %vm552_vm1, %v1229_v42  ;;  %v493_v44 = vpop.f32.mrb[5].mxu0 }
  0xf0   : > { %566 = vst.msk [vmem:[%s1555_s10 + $0x68] sm:$0xff] %vm552_vm1, %v1241_v43  ;;  %v533_v45 = vpop.f32.mrb[5].mxu1  ;;  %557 = vst.msk [vmem:[%s1555_s10 + $0x20] sm:$0xff] %vm552_vm1, %v493_v44 }
  0xf1   : > { %565 = vst.msk [vmem:[%s1555_s10 + $0x60] sm:$0xff] %vm552_vm1, %v533_v45 }
  0xf2   : > { %v1232_v46 = vpop.f32.mrb[6].mxu0 }
  0xf3   : > { %v1244_v47 = vpop.f32.mrb[6].mxu1  ;;  %560 = vst.msk [vmem:[%s1555_s10 + $0x38] sm:$0xff] %vm552_vm1, %v1232_v46  ;;  %v503_v48 = vpop.f32.mrb[7].mxu0 }
  0xf4   : > { %568 = vst.msk [vmem:[%s1555_s10 + $0x78] sm:$0xff] %vm552_vm1, %v1244_v47  ;;  %v543_v49 = vpop.f32.mrb[7].mxu1  ;;  %559 = vst.msk [vmem:[%s1555_s10 + $0x30] sm:$0xff] %vm552_vm1, %v503_v48 }
  0xf5   : > { %567 = vst.msk [vmem:[%s1555_s10 + $0x70] sm:$0xff] %vm552_vm1, %v543_v49 }
  0xf6   : > { %v1287_v51 = vpop.f32.mrb[8].mxu0 }
  0xf7   : > { %v1255_v50 = vpop.f32.mrb[8].mxu1  ;;  %884 = vst.msk [vmem:[%s1599_s16 + $0x8] sm:$0xff] %vm552_vm1, %v1287_v51  ;;  %v804_v53 = vpop.f32.mrb[9].mxu0 }
  0xf8   : > { %719 = vst.msk [vmem:[%s1593_s13 + $0x8] sm:$0xff] %vm552_vm1, %v1255_v50  ;;  %v639_v52 = vpop.f32.mrb[9].mxu1  ;;  %883 = vst.msk [vmem:[%s1599_s16] sm:$0xff] %vm552_vm1, %v804_v53 }
  0xf9   : > { %718 = vst.msk [vmem:[%s1593_s13] sm:$0xff] %vm552_vm1, %v639_v52 }
  0xfa   : > { %v1290_v55 = vpop.f32.mrb[10].mxu0 }
  0xfb   : > { %v1258_v54 = vpop.f32.mrb[10].mxu1  ;;  %886 = vst.msk [vmem:[%s1599_s16 + $0x18] sm:$0xff] %vm552_vm1, %v1290_v55  ;;  %v814_v57 = vpop.f32.mrb[11].mxu0 }
  0xfc   : > { %721 = vst.msk [vmem:[%s1593_s13 + $0x18] sm:$0xff] %vm552_vm1, %v1258_v54  ;;  %v649_v56 = vpop.f32.mrb[11].mxu1  ;;  %885 = vst.msk [vmem:[%s1599_s16 + $0x10] sm:$0xff] %vm552_vm1, %v814_v57 }
  0xfd   : > { %720 = vst.msk [vmem:[%s1593_s13 + $0x10] sm:$0xff] %vm552_vm1, %v649_v56 }
  0xfe   : > { %v1293_v59 = vpop.f32.mrb[12].mxu0 }
  0xff   : > { %v1261_v58 = vpop.f32.mrb[12].mxu1  ;;  %888 = vst.msk [vmem:[%s1599_s16 + $0x28] sm:$0xff] %vm552_vm1, %v1293_v59  ;;  %v824_v61 = vpop.f32.mrb[13].mxu0 }
 0x100   : > { %723 = vst.msk [vmem:[%s1593_s13 + $0x28] sm:$0xff] %vm552_vm1, %v1261_v58  ;;  %v659_v60 = vpop.f32.mrb[13].mxu1  ;;  %887 = vst.msk [vmem:[%s1599_s16 + $0x20] sm:$0xff] %vm552_vm1, %v824_v61 }
 0x101   : > { %722 = vst.msk [vmem:[%s1593_s13 + $0x20] sm:$0xff] %vm552_vm1, %v659_v60 }
 0x102   : > { %v1296_v63 = vpop.f32.mrb[14].mxu0 }
 0x103   : > { %v1264_v62 = vpop.f32.mrb[14].mxu1  ;;  %890 = vst.msk [vmem:[%s1599_s16 + $0x38] sm:$0xff] %vm552_vm1, %v1296_v63  ;;  %v834_v1 = vpop.f32.mrb[15].mxu0 }
 0x104   : > { %725 = vst.msk [vmem:[%s1593_s13 + $0x38] sm:$0xff] %vm552_vm1, %v1264_v62  ;;  %v669_v0 = vpop.f32.mrb[15].mxu1  ;;  %889 = vst.msk [vmem:[%s1599_s16 + $0x30] sm:$0xff] %vm552_vm1, %v834_v1 }
 0x105   : > { %724 = vst.msk [vmem:[%s1593_s13 + $0x30] sm:$0xff] %vm552_vm1, %v669_v0 }
 0x106   : > { %v1299_v3 = vpop.f32.mrb[16].mxu0 }
 0x107   : > { %v1267_v2 = vpop.f32.mrb[16].mxu1  ;;  %892 = vst.msk [vmem:[%s1599_s16 + $0x48] sm:$0xff] %vm552_vm1, %v1299_v3  ;;  %v844_v5 = vpop.f32.mrb[17].mxu0 }
 0x108   : > { %727 = vst.msk [vmem:[%s1593_s13 + $0x48] sm:$0xff] %vm552_vm1, %v1267_v2  ;;  %v679_v4 = vpop.f32.mrb[17].mxu1  ;;  %891 = vst.msk [vmem:[%s1599_s16 + $0x40] sm:$0xff] %vm552_vm1, %v844_v5 }
 0x109   : > { %726 = vst.msk [vmem:[%s1593_s13 + $0x40] sm:$0xff] %vm552_vm1, %v679_v4 }
 0x10a   : > { %v1302_v7 = vpop.f32.mrb[18].mxu0 }
 0x10b   : > { %v1270_v6 = vpop.f32.mrb[18].mxu1  ;;  %894 = vst.msk [vmem:[%s1599_s16 + $0x58] sm:$0xff] %vm552_vm1, %v1302_v7  ;;  %v854_v9 = vpop.f32.mrb[19].mxu0 }
 0x10c   : > { %729 = vst.msk [vmem:[%s1593_s13 + $0x58] sm:$0xff] %vm552_vm1, %v1270_v6  ;;  %v689_v8 = vpop.f32.mrb[19].mxu1  ;;  %893 = vst.msk [vmem:[%s1599_s16 + $0x50] sm:$0xff] %vm552_vm1, %v854_v9 }
 0x10d   : > { %728 = vst.msk [vmem:[%s1593_s13 + $0x50] sm:$0xff] %vm552_vm1, %v689_v8 }
 0x10e   : > { %v1305_v11 = vpop.f32.mrb[20].mxu0 }
 0x10f   : > { %v1273_v10 = vpop.f32.mrb[20].mxu1  ;;  %896 = vst.msk [vmem:[%s1599_s16 + $0x68] sm:$0xff] %vm552_vm1, %v1305_v11  ;;  %v864_v13 = vpop.f32.mrb[21].mxu0 }
 0x110   : > { %731 = vst.msk [vmem:[%s1593_s13 + $0x68] sm:$0xff] %vm552_vm1, %v1273_v10  ;;  %v699_v12 = vpop.f32.mrb[21].mxu1  ;;  %895 = vst.msk [vmem:[%s1599_s16 + $0x60] sm:$0xff] %vm552_vm1, %v864_v13 }
 0x111   : > { %730 = vst.msk [vmem:[%s1593_s13 + $0x60] sm:$0xff] %vm552_vm1, %v699_v12 }
 0x112   : > { %v1308_v15 = vpop.f32.mrb[22].mxu0 }
 0x113   : > { %v1276_v14 = vpop.f32.mrb[22].mxu1  ;;  %898 = vst.msk [vmem:[%s1599_s16 + $0x78] sm:$0xff] %vm552_vm1, %v1308_v15  ;;  %v874_v17 = vpop.f32.mrb[23].mxu0 }
 0x114   : > { %733 = vst.msk [vmem:[%s1593_s13 + $0x78] sm:$0xff] %vm552_vm1, %v1276_v14  ;;  %v709_v16 = vpop.f32.mrb[23].mxu1  ;;  %897 = vst.msk [vmem:[%s1599_s16 + $0x70] sm:$0xff] %vm552_vm1, %v874_v17 }
 0x115   : > { %732 = vst.msk [vmem:[%s1593_s13 + $0x70] sm:$0xff] %vm552_vm1, %v709_v16 }
 0x116 PF: > { %s17_s23 = sadd.s32 1, %s1383_s23   ;;  %s1681_s21 = smov %s1379_s22 }
 0x117   : > { %p14_p5 = scmp.ge.s32.totalorder %s17_s23, 4   ;;  %s1682_s22 = smov %s1684_s24 }
 0x119   :  { %16 = sbr.rel (!%p14_p5) target bundleno = 2 (0x2), region = 90 }

</bundles_post_ra>
